<compile_context>
chip_gen: v6e
topology: v6e:2x2x1
jax: 0.10.0
libtpu: 0.0.40
codegen_flags: <defaults>
</compile_context>

<pallas_src>
import functools

import jax
import jax.numpy as jnp
from jax import lax
from jax.experimental import pallas as pl
from jax.experimental.pallas import tpu as pltpu


# ---------------------------------------------------------------------------
# Fused ResBlock kernel factory (shapes / downsample flag are static closure).
# ---------------------------------------------------------------------------
def _make_resblock_kernel(H, W, Cin, Cout, downsample):
    if downsample:
        Ho, Wo = H // 2, W // 2
    else:
        Ho, Wo = H, W
    F1, F2 = 9 * Cin, 9 * Cout

    def _conv1_patches(x_ref):
        # im2col for conv1: 9 contiguous tap slices concatenated along lanes.
        slabs = []
        for ky in range(3):
            for kx in range(3):
                if downsample:
                    # x_ref holds a space-to-depth view of the padded input:
                    #   x_s2d[P, Q, (sy*2+sx)*Cin + c] = x_pad[2P+sy, 2Q+sx, c]
                    # so the stride-2 tap (ky, kx) is a contiguous slice.
                    by, sy = divmod(ky, 2)
                    bx, sx = divmod(kx, 2)
                    g = sy * 2 + sx
                    slabs.append(
                        x_ref[0, by:by + Ho, bx:bx + Wo,
                              g * Cin:(g + 1) * Cin])
                else:
                    # x_ref holds the zero-padded input (H+2, W+2, Cin).
                    slabs.append(x_ref[0, ky:ky + Ho, kx:kx + Wo, :])
        return jnp.concatenate(slabs, axis=-1)            # (Ho, Wo, 9*Cin)

    def _body(x_ref, w1_ref, b1_ref, w2_ref, b2_ref, wsc_ref, bsc_ref,
              o_ref, y1p_ref):
        # ---- conv1 (3x3, stride s, pad 1) + ReLU : one MXU matmul ----
        p1 = _conv1_patches(x_ref).reshape(Ho * Wo, F1)
        y1 = jnp.dot(p1, w1_ref[...], preferred_element_type=jnp.float32)
        y1 = jnp.maximum(y1 + b1_ref[...], 0.0)           # (Ho*Wo, Cout)

        # ---- zero-pad conv1 activation in VMEM scratch for conv2 ----
        y1p_ref[...] = jnp.zeros_like(y1p_ref)
        y1p_ref[1:Ho + 1, 1:Wo + 1, :] = y1.reshape(Ho, Wo, Cout)

        # ---- conv2 (3x3, stride 1, pad 1) + ReLU : one MXU matmul ----
        p2 = jnp.concatenate(
            [y1p_ref[ky:ky + Ho, kx:kx + Wo, :]
             for ky in range(3) for kx in range(3)],
            axis=-1).reshape(Ho * Wo, F2)
        y2 = jnp.dot(p2, w2_ref[...], preferred_element_type=jnp.float32)
        y2 = jnp.maximum(y2 + b2_ref[...], 0.0)           # (Ho*Wo, Cout)

        # ---- shortcut ----
        if downsample:
            # 1x1 stride-2 conv: the sy=sx=1 group of the space-to-depth
            # layout is exactly x[::2, ::2, :]; contract channels on the MXU.
            xs = x_ref[0, 0:Ho, 0:Wo, 3 * Cin:4 * Cin].reshape(Ho * Wo, Cin)
            sc = jnp.dot(xs, wsc_ref[...], preferred_element_type=jnp.float32)
            sc = sc + bsc_ref[...]
        else:
            # identity shortcut: centre crop of the padded input (Cin == Cout).
            sc = x_ref[0, 1:H + 1, 1:W + 1, :].reshape(Ho * Wo, Cin)

        o_ref[0] = jnp.maximum(y2 + sc, 0.0).reshape(Ho, Wo, Cout)

    if downsample:
        def kernel(x_ref, w1_ref, b1_ref, w2_ref, b2_ref, wsc_ref, bsc_ref,
                   o_ref, y1p_ref):
            _body(x_ref, w1_ref, b1_ref, w2_ref, b2_ref, wsc_ref, bsc_ref,
                  o_ref, y1p_ref)
    else:
        def kernel(x_ref, w1_ref, b1_ref, w2_ref, b2_ref, o_ref, y1p_ref):
            _body(x_ref, w1_ref, b1_ref, w2_ref, b2_ref, None, None,
                  o_ref, y1p_ref)

    return kernel, Ho, Wo


# ---------------------------------------------------------------------------
# Wrapper: layout glue (NCHW <-> NHWC, padding / space-to-depth, weight prep).
# ---------------------------------------------------------------------------
def _prep_w3x3(w):  # torch (Cout, Cin, 3, 3) -> (9*Cin, Cout), im2col order
    cout = w.shape[0]
    return jnp.transpose(w, (2, 3, 1, 0)).reshape(-1, cout)


@functools.partial(jax.jit, static_argnames=("downsample",))
def resblock_forward(x_nchw, params, *, downsample):
    N, Cin, H, W = x_nchw.shape
    Cout = params["w1"].shape[0]

    x_nhwc = jnp.transpose(x_nchw, (0, 2, 3, 1)).astype(jnp.float32)
    x_pad = jnp.pad(x_nhwc, ((0, 0), (1, 1), (1, 1), (0, 0)))

    if downsample:
        assert H % 2 == 0 and W % 2 == 0, "downsample path assumes even H, W"
        Hs, Ws = (H + 2) // 2, (W + 2) // 2
        # space-to-depth so every stride-2 access is a contiguous slice
        x_in = (x_pad.reshape(N, Hs, 2, Ws, 2, Cin)
                .transpose(0, 1, 3, 2, 4, 5)
                .reshape(N, Hs, Ws, 4 * Cin))
        in_block = (1, Hs, Ws, 4 * Cin)
    else:
        assert Cin == Cout, "identity shortcut requires Cin == Cout"
        x_in = x_pad
        in_block = (1, H + 2, W + 2, Cin)

    w1 = _prep_w3x3(params["w1"])
    b1 = params["b1"].reshape(1, Cout)
    w2 = _prep_w3x3(params["w2"])
    b2 = params["b2"].reshape(1, Cout)

    kernel, Ho, Wo = _make_resblock_kernel(H, W, Cin, Cout, downsample)

    const2 = lambda n: (0, 0)
    in_specs = [
        pl.BlockSpec(in_block, lambda n: (n, 0, 0, 0)),
        pl.BlockSpec(w1.shape, const2),
        pl.BlockSpec(b1.shape, const2),
        pl.BlockSpec(w2.shape, const2),
        pl.BlockSpec(b2.shape, const2),
    ]
    args = [x_in, w1, b1, w2, b2]
    if downsample:
        wsc = jnp.transpose(params["wsc"].reshape(Cout, Cin))   # (Cin, Cout)
        bsc = params["bsc"].reshape(1, Cout)
        in_specs += [pl.BlockSpec(wsc.shape, const2),
                     pl.BlockSpec(bsc.shape, const2)]
        args += [wsc, bsc]

    out_nhwc = pl.pallas_call(
        kernel,
        out_shape=jax.ShapeDtypeStruct((N, Ho, Wo, Cout), jnp.float32),
        grid=(N,),
        in_specs=in_specs,
        out_specs=pl.BlockSpec((1, Ho, Wo, Cout), lambda n: (n, 0, 0, 0)),
        scratch_shapes=[pltpu.VMEM((Ho + 2, Wo + 2, Cout), jnp.float32)],
        compiler_params=pltpu.CompilerParams(
            dimension_semantics=("parallel",)),
    )(*args)

    return jnp.transpose(out_nhwc, (0, 3, 1, 2))


# ---------------------------------------------------------------------------
# Plain-JAX reference (exact ResBlock semantics) and parameter init.
# ---------------------------------------------------------------------------
def ref_resblock(x, params, downsample):
    dn = ("NCHW", "OIHW", "NCHW")

    def conv(inp, w, b, stride, pad):
        y = lax.conv_general_dilated(
            inp, w, (stride, stride), ((pad, pad), (pad, pad)),
            dimension_numbers=dn, precision=lax.Precision.HIGHEST)
        return y + b.reshape(1, -1, 1, 1)

    s = 2 if downsample else 1
    shortcut = conv(x, params["wsc"], params["bsc"], 2, 0) if downsample else x
    h = jnp.maximum(conv(x, params["w1"], params["b1"], s, 1), 0.0)
    h = jnp.maximum(conv(h, params["w2"], params["b2"], 1, 1), 0.0)
    return jnp.maximum(h + shortcut, 0.0)


def _conv_init(key, cout, cin, k):
    kw, kb = jax.random.split(key)
    fan_in = cin * k * k
    bound = 1.0 / (fan_in ** 0.5)
    w = jax.random.uniform(kw, (cout, cin, k, k), jnp.float32, -bound, bound)
    b = jax.random.uniform(kb, (cout,), jnp.float32, -bound, bound)
    return w, b


def init_resblock_params(key, cin, cout, downsample):
    k1, k2, k3 = jax.random.split(key, 3)
    w1, b1 = _conv_init(k1, cout, cin, 3)
    w2, b2 = _conv_init(k2, cout, cout, 3)
    p = {"w1": w1, "b1": b1, "w2": w2, "b2": b2}
    if downsample:
        wsc, bsc = _conv_init(k3, cout, cin, 1)
        p["wsc"] = wsc
        p["bsc"] = bsc
    return p


# ---------------------------------------------------------------------------
if __name__ == "__main__":
    key = jax.random.PRNGKey(0)
    kx, k1, k2 = jax.random.split(key, 3)

    N, Cin, H, W, Cout = 2, 4, 16, 16, 8
    x = jax.random.normal(kx, (N, Cin, H, W), dtype=jnp.float32)

    params_ds = init_resblock_params(k1, Cin, Cout, downsample=True)
    params_id = init_resblock_params(k2, Cout, Cout, downsample=False)

    # downsample block: (2, 4, 16, 16) -> (2, 8, 8, 8)
    y_ds = resblock_forward(x, params_ds, downsample=True)
    # identity block stacked on top: (2, 8, 8, 8) -> (2, 8, 8, 8)
    y_id = resblock_forward(y_ds, params_id, downsample=False)
    y_ds, y_id = jax.block_until_ready((y_ds, y_id))

    assert y_ds.shape == (N, Cout, H // 2, W // 2) and y_ds.dtype == jnp.float32
    assert y_id.shape == (N, Cout, H // 2, W // 2) and y_id.dtype == jnp.float32
    assert bool(jnp.all(jnp.isfinite(y_ds))) and bool(jnp.all(jnp.isfinite(y_id)))

    # correctness vs the plain-JAX reference of the PyTorch module
    r_ds = ref_resblock(x, params_ds, downsample=True)
    r_id = ref_resblock(y_ds, params_id, downsample=False)
    err_ds = float(jnp.max(jnp.abs(y_ds - r_ds)))
    err_id = float(jnp.max(jnp.abs(y_id - r_id)))
    assert err_ds < 5e-2, f"downsample block mismatch: max abs err {err_ds}"
    assert err_id < 5e-2, f"identity block mismatch: max abs err {err_id}"

    print("KERNEL_OK")
</pallas_src>

<mosaic_0001>
module attributes {stable_mosaic.version = 11 : i64} {
  func.func @kernel(%arg0: i32, %arg1: memref<1x9x9x16xf32, #tpu.memory_space<vmem>>, %arg2: memref<36x8xf32, #tpu.memory_space<vmem>>, %arg3: memref<1x8xf32, #tpu.memory_space<vmem>>, %arg4: memref<72x8xf32, #tpu.memory_space<vmem>>, %arg5: memref<1x8xf32, #tpu.memory_space<vmem>>, %arg6: memref<4x8xf32, #tpu.memory_space<vmem>>, %arg7: memref<1x8xf32, #tpu.memory_space<vmem>>, %arg8: memref<1x8x8x8xf32, #tpu.memory_space<vmem>>, %arg9: memref<10x10x8xf32, #tpu.memory_space<vmem>>) attributes {dimension_semantics = [#tpu.dimension_semantics<parallel>], iteration_bounds = array<i64: 2>, scalar_prefetch = 0 : i64, scratch_operands = 1 : i64, tpu.core_type = #tpu.core_type<tc>, window_params = [{transform_indices = @transform_0, window_bounds = array<i64: 1, 9, 9, 16>}, {pipeline_mode = #tpu.pipeline_mode<synchronous>, transform_indices = @transform_1, window_bounds = array<i64: 36, 8>}, {pipeline_mode = #tpu.pipeline_mode<synchronous>, transform_indices = @transform_2, window_bounds = array<i64: 1, 8>}, {pipeline_mode = #tpu.pipeline_mode<synchronous>, transform_indices = @transform_3, window_bounds = array<i64: 72, 8>}, {pipeline_mode = #tpu.pipeline_mode<synchronous>, transform_indices = @transform_4, window_bounds = array<i64: 1, 8>}, {pipeline_mode = #tpu.pipeline_mode<synchronous>, transform_indices = @transform_5, window_bounds = array<i64: 4, 8>}, {pipeline_mode = #tpu.pipeline_mode<synchronous>, transform_indices = @transform_6, window_bounds = array<i64: 1, 8>}, {transform_indices = @transform_7, window_bounds = array<i64: 1, 8, 8, 8>}]} {
    %c0 = arith.constant 0 : index
    %c0_0 = arith.constant 0 : index
    %c0_1 = arith.constant 0 : index
    %c0_2 = arith.constant 0 : index
    %0 = vector.load %arg1[%c0, %c0_0, %c0_1, %c0_2] : memref<1x9x9x16xf32, #tpu.memory_space<vmem>>, vector<1x8x8x4xf32>
    %1 = vector.shape_cast %0 : vector<1x8x8x4xf32> to vector<8x8x4xf32>
    %c0_3 = arith.constant 0 : index
    %c0_4 = arith.constant 0 : index
    %c0_5 = arith.constant 0 : index
    %c4 = arith.constant 4 : index
    %2 = vector.load %arg1[%c0_3, %c0_4, %c0_5, %c4] : memref<1x9x9x16xf32, #tpu.memory_space<vmem>>, vector<1x8x8x4xf32>
    %3 = vector.shape_cast %2 : vector<1x8x8x4xf32> to vector<8x8x4xf32>
    %c0_6 = arith.constant 0 : index
    %c0_7 = arith.constant 0 : index
    %c1 = arith.constant 1 : index
    %c0_8 = arith.constant 0 : index
    %4 = vector.load %arg1[%c0_6, %c0_7, %c1, %c0_8] : memref<1x9x9x16xf32, #tpu.memory_space<vmem>>, vector<1x8x8x4xf32>
    %5 = vector.shape_cast %4 : vector<1x8x8x4xf32> to vector<8x8x4xf32>
    %c0_9 = arith.constant 0 : index
    %c0_10 = arith.constant 0 : index
    %c0_11 = arith.constant 0 : index
    %c8 = arith.constant 8 : index
    %6 = vector.load %arg1[%c0_9, %c0_10, %c0_11, %c8] : memref<1x9x9x16xf32, #tpu.memory_space<vmem>>, vector<1x8x8x4xf32>
    %7 = vector.shape_cast %6 : vector<1x8x8x4xf32> to vector<8x8x4xf32>
    %c0_12 = arith.constant 0 : index
    %c0_13 = arith.constant 0 : index
    %c0_14 = arith.constant 0 : index
    %c12 = arith.constant 12 : index
    %8 = vector.load %arg1[%c0_12, %c0_13, %c0_14, %c12] : memref<1x9x9x16xf32, #tpu.memory_space<vmem>>, vector<1x8x8x4xf32>
    %9 = vector.shape_cast %8 : vector<1x8x8x4xf32> to vector<8x8x4xf32>
    %c0_15 = arith.constant 0 : index
    %c0_16 = arith.constant 0 : index
    %c1_17 = arith.constant 1 : index
    %c8_18 = arith.constant 8 : index
    %10 = vector.load %arg1[%c0_15, %c0_16, %c1_17, %c8_18] : memref<1x9x9x16xf32, #tpu.memory_space<vmem>>, vector<1x8x8x4xf32>
    %11 = vector.shape_cast %10 : vector<1x8x8x4xf32> to vector<8x8x4xf32>
    %c0_19 = arith.constant 0 : index
    %c1_20 = arith.constant 1 : index
    %c0_21 = arith.constant 0 : index
    %c0_22 = arith.constant 0 : index
    %12 = vector.load %arg1[%c0_19, %c1_20, %c0_21, %c0_22] : memref<1x9x9x16xf32, #tpu.memory_space<vmem>>, vector<1x8x8x4xf32>
    %13 = vector.shape_cast %12 : vector<1x8x8x4xf32> to vector<8x8x4xf32>
    %c0_23 = arith.constant 0 : index
    %c1_24 = arith.constant 1 : index
    %c0_25 = arith.constant 0 : index
    %c4_26 = arith.constant 4 : index
    %14 = vector.load %arg1[%c0_23, %c1_24, %c0_25, %c4_26] : memref<1x9x9x16xf32, #tpu.memory_space<vmem>>, vector<1x8x8x4xf32>
    %15 = vector.shape_cast %14 : vector<1x8x8x4xf32> to vector<8x8x4xf32>
    %c0_27 = arith.constant 0 : index
    %c1_28 = arith.constant 1 : index
    %c1_29 = arith.constant 1 : index
    %c0_30 = arith.constant 0 : index
    %16 = vector.load %arg1[%c0_27, %c1_28, %c1_29, %c0_30] : memref<1x9x9x16xf32, #tpu.memory_space<vmem>>, vector<1x8x8x4xf32>
    %17 = vector.shape_cast %16 : vector<1x8x8x4xf32> to vector<8x8x4xf32>
    %18 = tpu.concatenate %1, %3, %5, %7, %9, %11, %13, %15, %17 in 2 : vector<8x8x4xf32>, vector<8x8x4xf32>, vector<8x8x4xf32>, vector<8x8x4xf32>, vector<8x8x4xf32>, vector<8x8x4xf32>, vector<8x8x4xf32>, vector<8x8x4xf32>, vector<8x8x4xf32> -> vector<8x8x36xf32>
    %19 = vector.shape_cast %18 : vector<8x8x36xf32> to vector<64x36xf32>
    %c0_31 = arith.constant 0 : index
    %c0_32 = arith.constant 0 : index
    %20 = vector.load %arg2[%c0_31, %c0_32] : memref<36x8xf32, #tpu.memory_space<vmem>>, vector<36x8xf32>
    %cst = arith.constant dense<0.000000e+00> : vector<64x8xf32>
    %21 = tpu.matmul %19, %20, %cst {dimension_numbers = #tpu.dot_dimension_numbers<[1], [0], [0], [1], [0, 0, 1, 1], [], []>} : vector<64x36xf32>, vector<36x8xf32>, vector<64x8xf32> -> vector<64x8xf32>
    %c0_33 = arith.constant 0 : index
    %c0_34 = arith.constant 0 : index
    %22 = vector.load %arg3[%c0_33, %c0_34] : memref<1x8xf32, #tpu.memory_space<vmem>>, vector<1x8xf32>
    %23 = vector.broadcast %22 : vector<1x8xf32> to vector<64x8xf32>
    %24 = arith.addf %21, %23 : vector<64x8xf32>
    %cst_35 = arith.constant 0.000000e+00 : f32
    %25 = vector.broadcast %cst_35 : f32 to vector<64x8xf32>
    %26 = arith.maximumf %24, %25 : vector<64x8xf32>
    %cst_36 = arith.constant 0.000000e+00 : f32
    %27 = vector.broadcast %cst_36 : f32 to vector<10x10x8xf32>
    %c0_37 = arith.constant 0 : index
    %c0_38 = arith.constant 0 : index
    %c0_39 = arith.constant 0 : index
    %28 = vector.load %arg9[%c0_37, %c0_38, %c0_39] : memref<10x10x8xf32, #tpu.memory_space<vmem>>, vector<10x10x8xf32>
    tpu.vector_store %arg9[%c0_37, %c0_38, %c0_39], %27 {strides = array<i32>} : memref<10x10x8xf32, #tpu.memory_space<vmem>>, vector<10x10x8xf32>,
    %29 = vector.shape_cast %26 : vector<64x8xf32> to vector<8x8x8xf32>
    %c1_40 = arith.constant 1 : index
    %c1_41 = arith.constant 1 : index
    %c0_42 = arith.constant 0 : index
    %30 = vector.load %arg9[%c1_40, %c1_41, %c0_42] : memref<10x10x8xf32, #tpu.memory_space<vmem>>, vector<8x8x8xf32>
    tpu.vector_store %arg9[%c1_40, %c1_41, %c0_42], %29 {strides = array<i32>} : memref<10x10x8xf32, #tpu.memory_space<vmem>>, vector<8x8x8xf32>,
    %c0_43 = arith.constant 0 : index
    %c0_44 = arith.constant 0 : index
    %c0_45 = arith.constant 0 : index
    %31 = vector.load %arg9[%c0_43, %c0_44, %c0_45] : memref<10x10x8xf32, #tpu.memory_space<vmem>>, vector<8x8x8xf32>
    %c0_46 = arith.constant 0 : index
    %c1_47 = arith.constant 1 : index
    %c0_48 = arith.constant 0 : index
    %32 = vector.load %arg9[%c0_46, %c1_47, %c0_48] : memref<10x10x8xf32, #tpu.memory_space<vmem>>, vector<8x8x8xf32>
    %c0_49 = arith.constant 0 : index
    %c2 = arith.constant 2 : index
    %c0_50 = arith.constant 0 : index
    %33 = vector.load %arg9[%c0_49, %c2, %c0_50] : memref<10x10x8xf32, #tpu.memory_space<vmem>>, vector<8x8x8xf32>
    %c1_51 = arith.constant 1 : index
    %c0_52 = arith.constant 0 : index
    %c0_53 = arith.constant 0 : index
    %34 = vector.load %arg9[%c1_51, %c0_52, %c0_53] : memref<10x10x8xf32, #tpu.memory_space<vmem>>, vector<8x8x8xf32>
    %c1_54 = arith.constant 1 : index
    %c1_55 = arith.constant 1 : index
    %c0_56 = arith.constant 0 : index
    %35 = vector.load %arg9[%c1_54, %c1_55, %c0_56] : memref<10x10x8xf32, #tpu.memory_space<vmem>>, vector<8x8x8xf32>
    %c1_57 = arith.constant 1 : index
    %c2_58 = arith.constant 2 : index
    %c0_59 = arith.constant 0 : index
    %36 = vector.load %arg9[%c1_57, %c2_58, %c0_59] : memref<10x10x8xf32, #tpu.memory_space<vmem>>, vector<8x8x8xf32>
    %c2_60 = arith.constant 2 : index
    %c0_61 = arith.constant 0 : index
    %c0_62 = arith.constant 0 : index
    %37 = vector.load %arg9[%c2_60, %c0_61, %c0_62] : memref<10x10x8xf32, #tpu.memory_space<vmem>>, vector<8x8x8xf32>
    %c2_63 = arith.constant 2 : index
    %c1_64 = arith.constant 1 : index
    %c0_65 = arith.constant 0 : index
    %38 = vector.load %arg9[%c2_63, %c1_64, %c0_65] : memref<10x10x8xf32, #tpu.memory_space<vmem>>, vector<8x8x8xf32>
    %c2_66 = arith.constant 2 : index
    %c2_67 = arith.constant 2 : index
    %c0_68 = arith.constant 0 : index
    %39 = vector.load %arg9[%c2_66, %c2_67, %c0_68] : memref<10x10x8xf32, #tpu.memory_space<vmem>>, vector<8x8x8xf32>
    %40 = tpu.concatenate %31, %32, %33, %34, %35, %36, %37, %38, %39 in 2 : vector<8x8x8xf32>, vector<8x8x8xf32>, vector<8x8x8xf32>, vector<8x8x8xf32>, vector<8x8x8xf32>, vector<8x8x8xf32>, vector<8x8x8xf32>, vector<8x8x8xf32>, vector<8x8x8xf32> -> vector<8x8x72xf32>
    %41 = vector.shape_cast %40 : vector<8x8x72xf32> to vector<64x72xf32>
    %c0_69 = arith.constant 0 : index
    %c0_70 = arith.constant 0 : index
    %42 = vector.load %arg4[%c0_69, %c0_70] : memref<72x8xf32, #tpu.memory_space<vmem>>, vector<72x8xf32>
    %cst_71 = arith.constant dense<0.000000e+00> : vector<64x8xf32>
    %43 = tpu.matmul %41, %42, %cst_71 {dimension_numbers = #tpu.dot_dimension_numbers<[1], [0], [0], [1], [0, 0, 1, 1], [], []>} : vector<64x72xf32>, vector<72x8xf32>, vector<64x8xf32> -> vector<64x8xf32>
    %c0_72 = arith.constant 0 : index
    %c0_73 = arith.constant 0 : index
    %44 = vector.load %arg5[%c0_72, %c0_73] : memref<1x8xf32, #tpu.memory_space<vmem>>, vector<1x8xf32>
    %45 = vector.broadcast %44 : vector<1x8xf32> to vector<64x8xf32>
    %46 = arith.addf %43, %45 : vector<64x8xf32>
    %cst_74 = arith.constant 0.000000e+00 : f32
    %47 = vector.broadcast %cst_74 : f32 to vector<64x8xf32>
    %48 = arith.maximumf %46, %47 : vector<64x8xf32>
    %c0_75 = arith.constant 0 : index
    %c0_76 = arith.constant 0 : index
    %c0_77 = arith.constant 0 : index
    %c12_78 = arith.constant 12 : index
    %49 = vector.load %arg1[%c0_75, %c0_76, %c0_77, %c12_78] : memref<1x9x9x16xf32, #tpu.memory_space<vmem>>, vector<1x8x8x4xf32>
    %50 = vector.shape_cast %49 : vector<1x8x8x4xf32> to vector<8x8x4xf32>
    %51 = vector.shape_cast %50 : vector<8x8x4xf32> to vector<64x4xf32>
    %c0_79 = arith.constant 0 : index
    %c0_80 = arith.constant 0 : index
    %52 = vector.load %arg6[%c0_79, %c0_80] : memref<4x8xf32, #tpu.memory_space<vmem>>, vector<4x8xf32>
    %cst_81 = arith.constant dense<0.000000e+00> : vector<64x8xf32>
    %53 = tpu.matmul %51, %52, %cst_81 {dimension_numbers = #tpu.dot_dimension_numbers<[1], [0], [0], [1], [0, 0, 1, 1], [], []>} : vector<64x4xf32>, vector<4x8xf32>, vector<64x8xf32> -> vector<64x8xf32>
    %c0_82 = arith.constant 0 : index
    %c0_83 = arith.constant 0 : index
    %54 = vector.load %arg7[%c0_82, %c0_83] : memref<1x8xf32, #tpu.memory_space<vmem>>, vector<1x8xf32>
    %55 = vector.broadcast %54 : vector<1x8xf32> to vector<64x8xf32>
    %56 = arith.addf %53, %55 : vector<64x8xf32>
    %57 = arith.addf %48, %56 : vector<64x8xf32>
    %cst_84 = arith.constant 0.000000e+00 : f32
    %58 = vector.broadcast %cst_84 : f32 to vector<64x8xf32>
    %59 = arith.maximumf %57, %58 : vector<64x8xf32>
    %60 = vector.shape_cast %59 : vector<64x8xf32> to vector<8x8x8xf32>
    %c0_85 = arith.constant 0 : index
    %c0_86 = arith.constant 0 : index
    %c0_87 = arith.constant 0 : index
    %c0_88 = arith.constant 0 : index
    %61 = vector.load %arg8[%c0_85, %c0_86, %c0_87, %c0_88] : memref<1x8x8x8xf32, #tpu.memory_space<vmem>>, vector<1x8x8x8xf32>
    %62 = vector.shape_cast %61 : vector<1x8x8x8xf32> to vector<8x8x8xf32>
    %63 = vector.shape_cast %60 : vector<8x8x8xf32> to vector<1x8x8x8xf32>
    tpu.vector_store %arg8[%c0_85, %c0_86, %c0_87, %c0_88], %63 {strides = array<i32>} : memref<1x8x8x8xf32, #tpu.memory_space<vmem>>, vector<1x8x8x8xf32>,
    return
  }
  func.func @transform_0(%arg0: i32) -> (i32, i32, i32, i32) {
    %c0_i32 = arith.constant 0 : i32
    %c0_i32_0 = arith.constant 0 : i32
    %c0_i32_1 = arith.constant 0 : i32
    %c0_i32_2 = arith.constant 0 : i32
    return %arg0, %c0_i32, %c0_i32_0, %c0_i32_1 : i32, i32, i32, i32
  }
  func.func @transform_1(%arg0: i32) -> (i32, i32) {
    %c0_i32 = arith.constant 0 : i32
    %c0_i32_0 = arith.constant 0 : i32
    %c0_i32_1 = arith.constant 0 : i32
    return %c0_i32, %c0_i32_0 : i32, i32
  }
  func.func @transform_2(%arg0: i32) -> (i32, i32) {
    %c0_i32 = arith.constant 0 : i32
    %c0_i32_0 = arith.constant 0 : i32
    %c0_i32_1 = arith.constant 0 : i32
    return %c0_i32, %c0_i32_0 : i32, i32
  }
  func.func @transform_3(%arg0: i32) -> (i32, i32) {
    %c0_i32 = arith.constant 0 : i32
    %c0_i32_0 = arith.constant 0 : i32
    %c0_i32_1 = arith.constant 0 : i32
    return %c0_i32, %c0_i32_0 : i32, i32
  }
  func.func @transform_4(%arg0: i32) -> (i32, i32) {
    %c0_i32 = arith.constant 0 : i32
    %c0_i32_0 = arith.constant 0 : i32
    %c0_i32_1 = arith.constant 0 : i32
    return %c0_i32, %c0_i32_0 : i32, i32
  }
  func.func @transform_5(%arg0: i32) -> (i32, i32) {
    %c0_i32 = arith.constant 0 : i32
    %c0_i32_0 = arith.constant 0 : i32
    %c0_i32_1 = arith.constant 0 : i32
    return %c0_i32, %c0_i32_0 : i32, i32
  }
  func.func @transform_6(%arg0: i32) -> (i32, i32) {
    %c0_i32 = arith.constant 0 : i32
    %c0_i32_0 = arith.constant 0 : i32
    %c0_i32_1 = arith.constant 0 : i32
    return %c0_i32, %c0_i32_0 : i32, i32
  }
  func.func @transform_7(%arg0: i32) -> (i32, i32, i32, i32) {
    %c0_i32 = arith.constant 0 : i32
    %c0_i32_0 = arith.constant 0 : i32
    %c0_i32_1 = arith.constant 0 : i32
    %c0_i32_2 = arith.constant 0 : i32
    return %arg0, %c0_i32, %c0_i32_0, %c0_i32_1 : i32, i32, i32, i32
  }
}

</mosaic_0001>

<bundles_post_ra>
// kernel: resblock_forward.1
= control target key start
LH: loop header
LB: loop body
LE: loop exit
PB: predicated region body
PF: predicated region fallthrough
CT: control target
= control target key end

     0   :  { %s1750_s24 = smov 0   ;;  %s2271_s0 = inlined_call_operand.vmem [shape: f32[2,9,9,16], index: 0, kind: input, shape index: {}]   ;;  %s2272_s1 = inlined_call_operand.vmem [shape: f32[36,8], index: 1, kind: input, shape index: {}]   ;;  %s2273_s2 = inlined_call_operand.vmem [shape: f32[1,8], index: 2, kind: input, shape index: {}]   ;;  %s2274_s3 = inlined_call_operand.vmem [shape: f32[72,8], index: 3, kind: input, shape index: {}]   ;;  %s2275_s4 = inlined_call_operand.vmem [shape: f32[1,8], index: 4, kind: input, shape index: {}]   ;;  %s2276_s5 = inlined_call_operand.vmem [shape: f32[4,8], index: 5, kind: input, shape index: {}]   ;;  %s2277_s6 = inlined_call_operand.vmem [shape: f32[1,8], index: 6, kind: input, shape index: {}]   ;;  %s2278_s7 = inlined_call_operand.vmem [shape: f32[2,8,8,8], index: 7, kind: output, shape index: {}]  }
   0x1 LB: > { %s1506_s25 = sadd.s32 4294967295, %s1696_s24   ;;  %p1510_p0 = scmp.ge.s32.totalorder %s1696_s24, 1  ;;  %s1696_s24 = sphi %s1750_s24, %s17_s24  }
   0x2   : > { %p237_p1 = scmp.lt.s32.totalorder %s1696_s24, 3 }
   0x4   : > { %p238_p2 = pnand %p1510_p0, %p237_p1 }
   0x5   : > { %p269_p3 = scmp.lt.s32.totalorder (!%p238_p2), %s1506_s25, 1  ;;  %s1698_s30 = smov (!%p238_p2), 8  }
   0x6   : > { %241 = sbr.rel (%p238_p2) target bundleno = 814 (0x32e), region = 48  ;;  %s1699_s8 = smov (!%p238_p2), 4  }
   0x7   : > { %s1700_s13 = smov (!%p238_p2), 12   ;;  %s1701_s18 = smov (!%p238_p2), 24  }
   0x8   : > { %s1702_s21 = smov (!%p238_p2), 32   ;;  %s1703_s22 = smov (!%p238_p2), 116  }
   0x9   : > { %s1705_s23 = smov (!%p238_p2), 48   ;;  %s1707_s27 = smov (!%p238_p2), 56  }
   0xa   : > { %s1708_s28 = smov (!%p238_p2), 64   ;;  %s1709_s11 = smov (!%p238_p2), 40  }
   0xb   : > { %s2280_s25 = smov (!%p269_p3, %s1506_s25), 1  ;;  %vm565_vm0 = vcmask 1043456   ;;  %v532_v5 = vld [vmem:[%s2272_s1 + $0x20] sm:$0xf]  ;;  %v531_v6 = vld [vmem:[%s2272_s1 + $0x18] sm:$0xff]  ;;  %v530_v7 = vld [vmem:[%s2272_s1 + $0x10] sm:$0xff] }
   0xc   : > { %s1669_s26 = smul.u32 144, %s2280_s25  ;;  %1601 = vmatprep.subr.msk.mxu0 %vm565_vm0, %v532_v5  ;;  %v529_v8 = vld [vmem:[%s2272_s1 + $0x8] sm:$0xff]  ;;  %v528_v11 = vld [vmem:[%s2272_s1] sm:$0xff]  ;;  %vm465_vm1 = vcmask 64512   ;;  %vm474_vm2 = vcmask 97280   ;;  %vm483_vm3 = vcmask 130048  }
   0xd   : > { %1602 = vmatpush3.msk.msra.mxu0 %vm565_vm0, %v532_v5  ;;  %vm492_vm4 = vcmask 162816   ;;  %vm501_vm5 = vcmask 195584   ;;  %vm510_vm6 = vcmask 228352   ;;  %vm519_vm7 = vcmask 261120  }
   0xe   : > { %s1764_s29 = scalar_lea.vmem %s2271_s0, %s1669_s26  ;;  %1603 = vmatprep.subr.mxu0 %v531_v6  ;;  %vm540_vm8 = vcmask 293888   ;;  %vm683_vm9 = vcmask 58368   ;;  %s1706_s26 = smov 16   ;;  %vm464_vm10 = vcmask 31744   ;;  %vm1073_vm11 = vcmask 326656  }
   0xf   : > { %v287_v0 = vld [vmem:[%s1764_s29 + $0x1] sm:$0xff]  ;;  %v288_v2 = vld [vmem:[%s1764_s29 + $0x11] sm:$0xff]  ;;  %1604 = vmatpush3.msra.mxu0 %v531_v6  ;;  %vm1082_vm12 = vcmask 392192   ;;  %vm1091_vm13 = vcmask 457728   ;;  %vm1100_vm14 = vcmask 523264   ;;  %vm1125_vm15 = vcmask 588800  }
  0x10   : > { %v1768_v1 = vld [vmem:[%s1764_s29] sm:$0xff]  ;;  %320 = vrot.lane.b32.xlu0 %v287_v0, %s1698_s30  ;;  %v1775_v3 = vld [vmem:[%s1764_s29 + $0x10] sm:$0xff]  ;;  %1605 = vmatprep.subr.mxu0 %v530_v7 }
  0x11   : > { %352 = vrot.lane.b32.xlu1 %v1768_v1, %s1699_s8  ;;  %v289_v4 = vld [vmem:[%s1764_s29 + $0x21] sm:$0xff]  ;;  %v290_v9 = vld [vmem:[%s1764_s29 + $0x31] sm:$0xff]  ;;  %1606 = vmatpush3.msra.mxu0 %v530_v7 }
  0x12   : > { %v1802_v10 = vld [vmem:[%s1764_s29 + $0x20] sm:$0xff]  ;;  %1607 = vmatprep.subr.mxu0 %v529_v8  ;;  %v1811_v12 = vld [vmem:[%s1764_s29 + $0x30] sm:$0xff] }
  0x13   : > { %1608 = vmatpush3.msra.mxu0 %v529_v8  ;;  %v291_v13 = vld [vmem:[%s1764_s29 + $0x41] sm:$0xff]  ;;  %v292_v14 = vld [vmem:[%s1764_s29 + $0x51] sm:$0xff] }
  0x14   : > { %322 = vrot.lane.b32.xlu0 %v288_v2, %s1698_s30  ;;  %1609 = vmatprep.subr.mxu0 %v528_v11  ;;  %v1827_v15 = vld [vmem:[%s1764_s29 + $0x40] sm:$0xff]  ;;  %v1833_v16 = vld [vmem:[%s1764_s29 + $0x50] sm:$0xff] }
  0x15   : > { %354 = vrot.lane.b32.xlu1 %v1775_v3, %s1699_s8  ;;  %1610 = vmatpush3.msra.mxu0 %v528_v11  ;;  %v293_v17 = vld [vmem:[%s1764_s29 + $0x61] sm:$0xff]  ;;  %v294_v18 = vld [vmem:[%s1764_s29 + $0x71] sm:$0xff] }
  0x16   : > { %v1849_v19 = vld [vmem:[%s1764_s29 + $0x60] sm:$0xff]  ;;  %v1855_v20 = vld [vmem:[%s1764_s29 + $0x70] sm:$0xff] }
  0x17   : > { %v1521_v21 = vld [vmem:[%s1764_s29 + $0x80] sm:$0xff] }
  0x18   : > { %376 = vrot.lane.b32.xlu0 %v287_v0, %s1700_s13  ;;  %v1529_v22 = vld [vmem:[%s1764_s29 + $0x81] sm:$0xff] }
  0x19   : > { %324 = vrot.lane.b32.xlu1 %v289_v4, %s1698_s30 }
  0x1c   : > { %378 = vrot.lane.b32.xlu0 %v288_v2, %s1700_s13 }
  0x1d   : > { %408 = vrot.lane.b32.xlu1 %v1775_v3, %s1701_s18 }
  0x20   : > { %326 = vrot.lane.b32.xlu0 %v290_v9, %s1698_s30 }
  0x21   : > { %356 = vrot.lane.b32.xlu1 %v1802_v10, %s1699_s8 }
  0x24   : > { %410 = vrot.lane.b32.xlu0 %v1802_v10, %s1701_s18 }
  0x25   : > { %358 = vrot.lane.b32.xlu1 %v1811_v12, %s1699_s8 }
  0x28   : > { %440 = vrot.lane.b32.xlu0 %v288_v2, %s1702_s21 }
  0x29   : > { %380 = vrot.lane.b32.xlu1 %v289_v4, %s1700_s13 }
  0x2c   : > { %442 = vrot.lane.b32.xlu0 %v289_v4, %s1702_s21 }
  0x2d   : > { %328 = vrot.lane.b32.xlu1 %v291_v13, %s1698_s30 }
  0x30   : > { %382 = vrot.lane.b32.xlu0 %v290_v9, %s1700_s13 }
  0x31   : > { %412 = vrot.lane.b32.xlu1 %v1811_v12, %s1701_s18 }
  0x34   : > { %330 = vrot.lane.b32.xlu0 %v292_v14, %s1698_s30 }
  0x35   : > { %360 = vrot.lane.b32.xlu1 %v1827_v15, %s1699_s8 }
  0x38   : > { %414 = vrot.lane.b32.xlu0 %v1827_v15, %s1701_s18 }
  0x39   : > { %362 = vrot.lane.b32.xlu1 %v1833_v16, %s1699_s8 }
  0x3c   : > { %444 = vrot.lane.b32.xlu0 %v290_v9, %s1702_s21 }
  0x3d   : > { %384 = vrot.lane.b32.xlu1 %v291_v13, %s1700_s13 }
  0x40   : > { %446 = vrot.lane.b32.xlu0 %v291_v13, %s1702_s21 }
  0x41   : > { %332 = vrot.lane.b32.xlu1 %v293_v17, %s1698_s30 }
  0x44   : > { %386 = vrot.lane.b32.xlu0 %v292_v14, %s1700_s13 }
  0x45   : > { %416 = vrot.lane.b32.xlu1 %v1833_v16, %s1701_s18 }
  0x48   : > { %334 = vrot.lane.b32.xlu0 %v294_v18, %s1698_s30 }
  0x49   : > { %364 = vrot.lane.b32.xlu1 %v1849_v19, %s1699_s8 }
  0x4c   : > { %418 = vrot.lane.b32.xlu0 %v1849_v19, %s1701_s18 }
  0x4d   : > { %366 = vrot.lane.b32.xlu1 %v1855_v20, %s1699_s8 }
  0x50   : > { %448 = vrot.lane.b32.xlu0 %v292_v14, %s1702_s21 }
  0x51   : > { %388 = vrot.lane.b32.xlu1 %v293_v17, %s1700_s13 }
  0x54   : > { %450 = vrot.lane.b32.xlu0 %v293_v17, %s1702_s21 }
  0x55   : > { %390 = vrot.lane.b32.xlu1 %v294_v18, %s1700_s13 }
  0x58   : > { %420 = vrot.lane.b32.xlu0 %v1855_v20, %s1701_s18 }
  0x59   : > { %422 = vrot.lane.b32.xlu1 %v1521_v21, %s1701_s18 }
  0x5c   : > { %452 = vrot.lane.b32.xlu0 %v294_v18, %s1702_s21 }
  0x5d   : > { %454 = vrot.lane.b32.xlu1 %v1529_v22, %s1702_s21 }
  0x61   : > { %1287 = vrot.lane.b32.xlu1 %v1768_v1, %s1703_s22 }
  0x82   : > { %v321_v23 = vpop.permute.xlu0 %320 }
  0x83   : > { %v353_v24 = vpop.permute.xlu1 %352  ;;  %v466_v31 = vsel %vm465_vm1, %v1768_v1, %v321_v23 }
  0x84   : > { %v475_v32 = vsel %vm474_vm2, %v466_v31, %v353_v24 }
  0x85   : > { %v484_v36 = vsel %vm483_vm3, %v475_v32, %v353_v24 }
  0x86   : > { %v323_v25 = vpop.permute.xlu0 %322 }
  0x87   : > { %v355_v26 = vpop.permute.xlu1 %354  ;;  %v467_v35 = vsel %vm465_vm1, %v1775_v3, %v323_v25 }
  0x88   : > { %v476_v37 = vsel %vm474_vm2, %v467_v35, %v355_v26 }
  0x89   : > { %v485_v42 = vsel %vm483_vm3, %v476_v37, %v355_v26 }
  0x8a   : > { %v377_v27 = vpop.permute.xlu0 %376 }
  0x8b   : > { %v325_v28 = vpop.permute.xlu1 %324  ;;  %v493_v38 = vsel %vm492_vm4, %v484_v36, %v377_v27 }
  0x8c   : > { %v468_v53 = vsel %vm465_vm1, %v1802_v10, %v325_v28 }
  0x8e   : > { %v379_v29 = vpop.permute.xlu0 %378 }
  0x8f   : > { %v409_v30 = vpop.permute.xlu1 %408  ;;  %v494_v43 = vsel %vm492_vm4, %v485_v42, %v379_v29 }
  0x90   : > { %v502_v41 = vsel %vm501_vm5, %v493_v38, %v409_v30 }
  0x91   : > { %v511_v46 = vsel %vm510_vm6, %v502_v41, %v409_v30 }
  0x92   : > { %v327_v33 = vpop.permute.xlu0 %326 }
  0x93   : > { %v357_v34 = vpop.permute.xlu1 %356  ;;  %v469_v60 = vsel %vm465_vm1, %v1811_v12, %v327_v33 }
  0x94   : > { %v477_v56 = vsel %vm474_vm2, %v468_v53, %v357_v34 }
  0x95   : > { %v486_v59 = vsel %vm483_vm3, %v477_v56, %v357_v34 }
  0x96   : > { %v411_v39 = vpop.permute.xlu0 %410 }
  0x97   : > { %v359_v40 = vpop.permute.xlu1 %358  ;;  %v503_v47 = vsel %vm501_vm5, %v494_v43, %v411_v39 }
  0x98   : > { %v512_v49 = vsel %vm510_vm6, %v503_v47, %v411_v39  ;;  %v478_v61 = vsel %vm474_vm2, %v469_v60, %v359_v40 }
  0x99   : > { %v487_v2 = vsel %vm483_vm3, %v478_v61, %v359_v40 }
  0x9a   : > { %v441_v44 = vpop.permute.xlu0 %440 }
  0x9b   : > { %v381_v45 = vpop.permute.xlu1 %380  ;;  %v520_v48 = vsel %vm519_vm7, %v511_v46, %v441_v44 }
  0x9c   : > { %1611 = vmatprep.mubr.msk.f32.mxu0 %vm540_vm8, %v520_v48  ;;  %v495_v62 = vsel %vm492_vm4, %v486_v59, %v381_v45 }
  0x9e   : > { %v443_v50 = vpop.permute.xlu0 %442 }
  0x9f   : > { %v329_v51 = vpop.permute.xlu1 %328  ;;  %v521_v52 = vsel %vm519_vm7, %v512_v49, %v443_v50 }
  0xa0   : > { %1612 = vmatmul.mubr.msk.f32.vlgmr.msra.gmra.mxu0 %vm540_vm8, %v521_v52  ;;  %v470_v18 = vsel %vm465_vm1, %v1827_v15, %v329_v51 }
  0xa2   : > { %v383_v54 = vpop.permute.xlu0 %382 }
  0xa3   : > { %v413_v55 = vpop.permute.xlu1 %412  ;;  %v496_v4 = vsel %vm492_vm4, %v487_v2, %v383_v54 }
  0xa4   : > { %v504_v1 = vsel %vm501_vm5, %v495_v62, %v413_v55  ;;  %v1704_v62 = vmov 0.0  }
  0xa5   : > { %v513_v5 = vsel %vm510_vm6, %v504_v1, %v413_v55  ;;  %687 = vst.msk [vmem:[#allocation2 + $0x20] sm:$0xff] %vm465_vm1, %v1704_v62  ;;  %682 = vst.msk [vmem:[#allocation2] sm:$0xff] %vm465_vm1, %v1704_v62 }
  0xa6   : > { %v331_v57 = vpop.permute.xlu0 %330  ;;  %688 = vst.msk [vmem:[#allocation2 + $0x28] sm:$0x3] %vm683_vm9, %v1704_v62  ;;  %684 = vst.msk [vmem:[#allocation2 + $0x8] sm:$0x3] %vm683_vm9, %v1704_v62 }
  0xa7   : > { %v361_v58 = vpop.permute.xlu1 %360  ;;  %v471_v27 = vsel %vm465_vm1, %v1833_v16, %v331_v57  ;;  %685 = vst.msk [vmem:[#allocation2 + $0x10] sm:$0xff] %vm465_vm1, %v1704_v62  ;;  %689 = vst.msk [vmem:[#allocation2 + $0x30] sm:$0xff] %vm465_vm1, %v1704_v62 }
  0xa8   : > { %v479_v23 = vsel %vm474_vm2, %v470_v18, %v361_v58  ;;  %686 = vst.msk [vmem:[#allocation2 + $0x18] sm:$0x3] %vm683_vm9, %v1704_v62  ;;  %690 = vst.msk [vmem:[#allocation2 + $0x38] sm:$0x3] %vm683_vm9, %v1704_v62 }
  0xa9   : > { %v488_v26 = vsel %vm483_vm3, %v479_v23, %v361_v58  ;;  %691 = vst.msk [vmem:[#allocation2 + $0x40] sm:$0xff] %vm465_vm1, %v1704_v62  ;;  %693 = vst.msk [vmem:[#allocation2 + $0x50] sm:$0xff] %vm465_vm1, %v1704_v62 }
  0xaa   : > { %v415_v63 = vpop.permute.xlu0 %414  ;;  %692 = vst.msk [vmem:[#allocation2 + $0x48] sm:$0x3] %vm683_vm9, %v1704_v62  ;;  %694 = vst.msk [vmem:[#allocation2 + $0x58] sm:$0x3] %vm683_vm9, %v1704_v62 }
  0xab   : > { %v363_v0 = vpop.permute.xlu1 %362  ;;  %v505_v8 = vsel %vm501_vm5, %v496_v4, %v415_v63  ;;  %695 = vst.msk [vmem:[#allocation2 + $0x60] sm:$0xff] %vm465_vm1, %v1704_v62  ;;  %697 = vst.msk [vmem:[#allocation2 + $0x70] sm:$0xff] %vm465_vm1, %v1704_v62 }
  0xac   : > { %v514_v11 = vsel %vm510_vm6, %v505_v8, %v415_v63  ;;  %v480_v28 = vsel %vm474_vm2, %v471_v27, %v363_v0  ;;  %696 = vst.msk [vmem:[#allocation2 + $0x68] sm:$0x3] %vm683_vm9, %v1704_v62  ;;  %698 = vst.msk [vmem:[#allocation2 + $0x78] sm:$0x3] %vm683_vm9, %v1704_v62 }
  0xad   : > { %v489_v35 = vsel %vm483_vm3, %v480_v28, %v363_v0  ;;  %699 = vst.msk [vmem:[#allocation2 + $0x80] sm:$0xff] %vm465_vm1, %v1704_v62  ;;  %701 = vst.msk [vmem:[#allocation2 + $0x90] sm:$0xff] %vm465_vm1, %v1704_v62  ;;  %v720_v63 = vld [vmem:[#allocation2 + $0x1] sm:$0xff] }
  0xae   : > { %v445_v6 = vpop.permute.xlu0 %444  ;;  %700 = vst.msk [vmem:[#allocation2 + $0x88] sm:$0x3] %vm683_vm9, %v1704_v62  ;;  %702 = vst.msk [vmem:[#allocation2 + $0x98] sm:$0x3] %vm683_vm9, %v1704_v62  ;;  %793 = vrot.lane.b32.xlu0 %v720_v63, %s1698_s30  ;;  %v728_v1 = vld [vmem:[#allocation2 + $0x2] sm:$0xff] }
  0xaf   : > { %v385_v7 = vpop.permute.xlu1 %384  ;;  %v522_v9 = vsel %vm519_vm7, %v513_v5, %v445_v6  ;;  %v712_v5 = vld [vmem:[#allocation2] sm:$0xff]  ;;  %v1110_v62 = vld [vmem:[%s2274_s3 + $0x8] sm:$0xff] }
  0xb0   : > { %1614 = vmatprep.mubr.msk.f32.mxu0 %vm540_vm8, %v522_v9  ;;  %v497_v29 = vsel %vm492_vm4, %v488_v26, %v385_v7 }
  0xb2   : > { %v447_v13 = vpop.permute.xlu0 %446  ;;  %825 = vrot.lane.b32.xlu0 %v728_v1, %s1706_s26 }
  0xb3   : > { %v333_v14 = vpop.permute.xlu1 %332  ;;  %v523_v17 = vsel %vm519_vm7, %v514_v11, %v447_v13  ;;  %v1981_v13 = vld [vmem:[%s2276_s5] sm:$0xf] }
  0xb4   : > { %1615 = vmatmul.mubr.msk.f32.gmra.mxu0 %vm540_vm8, %v523_v17  ;;  %v472_v32 = vsel %vm465_vm1, %v1849_v19, %v333_v14  ;;  %v768_v0 = vld [vmem:[#allocation2 + $0x90] sm:$0xff]  ;;  %1653 = vmatprep.subr.msk.mxu0 %vm565_vm0, %v1981_v13  ;;  %v1991_v14 = vld [vmem:[%s2273_s2] ss:$0 sm:$0xff] }
  0xb5   : > { %967 = vrot.lane.b32.xlu1 %v768_v0, %s1705_s23  ;;  %v776_v2 = vld [vmem:[#allocation2 + $0x91] sm:$0xff]  ;;  %1654 = vmatpush3.msk.msra.mxu0 %vm565_vm0, %v1981_v13  ;;  %v1109_v0 = vld [vmem:[%s2274_s3] sm:$0xff] }
  0xb6   : > { %v387_v21 = vpop.permute.xlu0 %386  ;;  %v784_v4 = vld [vmem:[#allocation2 + $0x92] sm:$0xff]  ;;  %1289 = vrot.lane.b32.xlu0 %v1775_v3, %s1703_s22 }
  0xb7   : > { %v417_v22 = vpop.permute.xlu1 %416  ;;  %v498_v36 = vsel %vm492_vm4, %v489_v35, %v387_v21 }
  0xb8   : > { %v506_v33 = vsel %vm501_vm5, %v497_v29, %v417_v22 }
  0xb9   : > { %v515_v37 = vsel %vm510_vm6, %v506_v33, %v417_v22  ;;  %999 = vrot.lane.b32.xlu1 %v776_v2, %s1707_s27 }
  0xba   : > { %v335_v24 = vpop.permute.xlu0 %334 }
  0xbb   : > { %v365_v25 = vpop.permute.xlu1 %364  ;;  %v473_v34 = vsel %vm465_vm1, %v1855_v20, %v335_v24 }
  0xbc   : > { %v481_v38 = vsel %vm474_vm2, %v472_v32, %v365_v25 }
  0xbd   : > { %v490_v44 = vsel %vm483_vm3, %v481_v38, %v365_v25  ;;  %1031 = vrot.lane.b32.xlu1 %v784_v4, %s1708_s28 }
  0xbe   : > { %v419_v30 = vpop.permute.xlu0 %418 }
  0xbf   : > { %v367_v31 = vpop.permute.xlu1 %366  ;;  %v507_v42 = vsel %vm501_vm5, %v498_v36, %v419_v30 }
  0xc0   : > { %v482_v39 = vsel %vm474_vm2, %v473_v34, %v367_v31  ;;  %v516_v46 = vsel %vm510_vm6, %v507_v42, %v419_v30 }
  0xc1   : > { %v491_v45 = vsel %vm483_vm3, %v482_v39, %v367_v31 }
  0xc2   : > { %v449_v40 = vpop.permute.xlu0 %448 }
  0xc3   : > { %v389_v41 = vpop.permute.xlu1 %388  ;;  %v524_v43 = vsel %vm519_vm7, %v515_v37, %v449_v40 }
  0xc4   : > { %1617 = vmatprep.mubr.msk.f32.mxu0 %vm540_vm8, %v524_v43  ;;  %v499_v50 = vsel %vm492_vm4, %v490_v44, %v389_v41 }
  0xc6   : > { %v451_v47 = vpop.permute.xlu0 %450 }
  0xc7   : > { %v391_v48 = vpop.permute.xlu1 %390  ;;  %v525_v49 = vsel %vm519_vm7, %v516_v46, %v451_v47  ;;  %v1117_v46 = vld [vmem:[%s2274_s3 + $0x40] sm:$0xff] }
  0xc8   : > { %v500_v51 = vsel %vm492_vm4, %v491_v45, %v391_v48  ;;  %1618 = vmatmul.mubr.msk.f32.gmra.mxu0 %vm540_vm8, %v525_v49  ;;  %1623 = vmatprep.subr.mxu1 %v1117_v46  ;;  %v1116_v48 = vld [vmem:[%s2274_s3 + $0x38] sm:$0xff] }
  0xc9   : > { %1624 = vmatpush3.msra.mxu1 %v1117_v46 }
  0xca   : > { %v421_v52 = vpop.permute.xlu0 %420  ;;  %1625 = vmatprep.subr.mxu1 %v1116_v48 }
  0xcb   : > { %v423_v53 = vpop.permute.xlu1 %422  ;;  %v508_v54 = vsel %vm501_vm5, %v499_v50, %v421_v52  ;;  %v1115_v50 = vld [vmem:[%s2274_s3 + $0x30] sm:$0xff]  ;;  %1626 = vmatpush3.msra.mxu1 %v1116_v48 }
  0xcc   : > { %v509_v55 = vsel %vm501_vm5, %v500_v51, %v423_v53  ;;  %v517_v56 = vsel %vm510_vm6, %v508_v54, %v421_v52  ;;  %1627 = vmatprep.subr.mxu1 %v1115_v50  ;;  %v1114_v54 = vld [vmem:[%s2274_s3 + $0x28] sm:$0xff] }
  0xcd   : > { %v518_v57 = vsel %vm510_vm6, %v509_v55, %v423_v53  ;;  %1628 = vmatpush3.msra.mxu1 %v1115_v50 }
  0xce   : > { %v453_v58 = vpop.permute.xlu0 %452  ;;  %1629 = vmatprep.subr.mxu1 %v1114_v54 }
  0xcf   : > { %v455_v59 = vpop.permute.xlu1 %454  ;;  %v526_v60 = vsel %vm519_vm7, %v517_v56, %v453_v58  ;;  %v1113_v58 = vld [vmem:[%s2274_s3 + $0x20] sm:$0xff]  ;;  %1630 = vmatpush3.msra.mxu1 %v1114_v54 }
  0xd0   : > { %v527_v61 = vsel %vm519_vm7, %v518_v57, %v455_v59  ;;  %1620 = vmatprep.mubr.msk.f32.mxu0 %vm540_vm8, %v526_v60  ;;  %1631 = vmatprep.subr.mxu1 %v1113_v58  ;;  %v1112_v60 = vld [vmem:[%s2274_s3 + $0x18] sm:$0xff] }
  0xd1   : > { %1621 = vmatmul.mubr.msk.f32.gmra.mxu0 %vm540_vm8, %v527_v61  ;;  %1632 = vmatpush3.msra.mxu1 %v1113_v58  ;;  %v1111_v61 = vld [vmem:[%s2274_s3 + $0x10] sm:$0xff] }
  0xd2   : > { %1633 = vmatprep.subr.mxu1 %v1112_v60 }
  0xd3   : > { %v1288_v7 = vpop.permute.xlu1 %1287  ;;  %1634 = vmatpush3.msra.mxu1 %v1112_v60 }
  0xd4   : > { %1655 = vmatprep.mubr.msk.f32.mxu0 %vm464_vm10, %v1288_v7  ;;  %1635 = vmatprep.subr.mxu1 %v1111_v61 }
  0xd5   : > { %1636 = vmatpush3.msra.mxu1 %v1111_v61 }
  0xd6   : > { %1637 = vmatprep.subr.mxu1 %v1110_v62 }
  0xd7   : > { %1638 = vmatpush3.msra.mxu1 %v1110_v62 }
  0xd8   : > { %1639 = vmatprep.subr.mxu1 %v1109_v0 }
  0xd9   : > { %1640 = vmatpush3.msra.mxu1 %v1109_v0 }
  0xda   : > { %1667 = vmatprep.subr.msk.mxu1 %vm565_vm0, %v1981_v13 }
 0x120   : > { %v794_v6 = vpop.permute.xlu0 %793 }
 0x121   : > { %v1041_v8 = vsel %vm465_vm1, %v712_v5, %v794_v6 }
 0x124   : > { %v826_v9 = vpop.permute.xlu0 %825 }
 0x125   : > { %v1976_v11 = vsel %vm483_vm3, %v1041_v8, %v826_v9 }
 0x128   : > { %v1290_v3 = vpop.permute.xlu0 %1289 }
 0x129   : > { %1656 = vmatmul.mubr.msk.f32.vlgmr.msra.gmra.mxu0 %vm464_vm10, %v1290_v3  ;;  %v2110_v3 = vpop.permute.xlu1 %967 }
 0x160   : > { %v1613_v17 = vpop.f32.mrf.mxu0 }
 0x161   : > { %v641_v18 = vadd.f32 %v1613_v17, %v1991_v14 }
 0x162   : > { %v635_v21 = vpop.f32.mrf.mxu0 }
 0x163   : > { %v675_v22 = vmax.f32 %v641_v18, 0.0  ;;  %v636_v23 = vadd.f32 %v1991_v14, %v635_v21 }
 0x165   : > { %705 = vst.msk [vmem:[#allocation2 + $0x21] sm:$0xff] %vm465_vm1, %v675_v22  ;;  %v674_v24 = vmax.f32 %v636_v23, 0.0 }
 0x167   : > { %704 = vst.msk [vmem:[#allocation2 + $0x11] sm:$0xff] %vm465_vm1, %v674_v24 }
 0x16c   : > { %v745_v25 = vld [vmem:[#allocation2 + $0x21] sm:$0xff] }
 0x16d   : > { %v1997_v26 = vld [vmem:[#allocation2 + $0x20] sm:$0xff]  ;;  %891 = vrot.lane.b32.xlu0 %v745_v25, %s1702_s21 }
 0x16e   : > { %859 = vrot.lane.b32.xlu1 %v1997_v26, %s1701_s18  ;;  %v753_v27 = vld [vmem:[#allocation2 + $0x22] sm:$0xff]  ;;  %v2004_v29 = vld [vmem:[#allocation2 + $0x10] sm:$0xff] }
 0x16f   : > { %v744_v34 = vld [vmem:[#allocation2 + $0x11] sm:$0xff] }
 0x170   : > { %v729_v40 = vld [vmem:[#allocation2 + $0x12] sm:$0xff] }
 0x171   : > { %923 = vrot.lane.b32.xlu0 %v753_v27, %s1709_s11 }
 0x172   : > { %797 = vrot.lane.b32.xlu1 %v745_v25, %s1698_s30 }
 0x174   : > { %v1616_v28 = vpop.f32.mrf.mxu0 }
 0x175   : > { %v651_v30 = vadd.f32 %v1616_v28, %v1991_v14  ;;  %857 = vrot.lane.b32.xlu0 %v2004_v29, %s1701_s18 }
 0x176   : > { %829 = vrot.lane.b32.xlu1 %v753_v27, %s1706_s26  ;;  %v645_v31 = vpop.f32.mrf.mxu0 }
 0x177   : > { %v677_v32 = vmax.f32 %v651_v30, 0.0  ;;  %v646_v33 = vadd.f32 %v1991_v14, %v645_v31 }
 0x179   : > { %707 = vst.msk [vmem:[#allocation2 + $0x41] sm:$0xff] %vm465_vm1, %v677_v32  ;;  %v676_v35 = vmax.f32 %v646_v33, 0.0  ;;  %889 = vrot.lane.b32.xlu0 %v744_v34, %s1702_s21 }
 0x17a   : > { %953 = vrot.lane.b32.xlu1 %v1997_v26, %s1705_s23 }
 0x17b   : > { %706 = vst.msk [vmem:[#allocation2 + $0x31] sm:$0xff] %vm465_vm1, %v676_v35 }
 0x17e   : > { %985 = vrot.lane.b32.xlu1 %v745_v25, %s1707_s27 }
 0x180   : > { %v2017_v36 = vld [vmem:[#allocation2 + $0x40] sm:$0xff] }
 0x181   : > { %863 = vrot.lane.b32.xlu0 %v2017_v36, %s1701_s18  ;;  %v724_v37 = vld [vmem:[#allocation2 + $0x41] sm:$0xff] }
 0x182   : > { %1017 = vrot.lane.b32.xlu1 %v753_v27, %s1708_s28  ;;  %v755_v39 = vld [vmem:[#allocation2 + $0x42] sm:$0xff]  ;;  %v723_v45 = vld [vmem:[#allocation2 + $0x31] sm:$0xff] }
 0x183   : > { %v731_v49 = vld [vmem:[#allocation2 + $0x32] sm:$0xff] }
 0x184   : > { %v2048_v57 = vld [vmem:[#allocation2 + $0x30] sm:$0xff] }
 0x185   : > { %801 = vrot.lane.b32.xlu0 %v724_v37, %s1698_s30 }
 0x186   : > { %795 = vrot.lane.b32.xlu1 %v744_v34, %s1698_s30 }
 0x188   : > { %v1619_v38 = vpop.f32.mrf.mxu0 }
 0x189   : > { %v661_v41 = vadd.f32 %v1619_v38, %v1991_v14  ;;  %927 = vrot.lane.b32.xlu0 %v755_v39, %s1709_s11 }
 0x18a   : > { %827 = vrot.lane.b32.xlu1 %v729_v40, %s1706_s26  ;;  %v655_v42 = vpop.f32.mrf.mxu0 }
 0x18b   : > { %v679_v43 = vmax.f32 %v661_v41, 0.0  ;;  %v656_v44 = vadd.f32 %v1991_v14, %v655_v42 }
 0x18d   : > { %709 = vst.msk [vmem:[#allocation2 + $0x61] sm:$0xff] %vm465_vm1, %v679_v43  ;;  %v678_v47 = vmax.f32 %v656_v44, 0.0  ;;  %799 = vrot.lane.b32.xlu0 %v723_v45, %s1698_s30 }
 0x18e   : > { %921 = vrot.lane.b32.xlu1 %v729_v40, %s1709_s11 }
 0x18f   : > { %708 = vst.msk [vmem:[#allocation2 + $0x51] sm:$0xff] %vm465_vm1, %v678_v47 }
 0x191   : > { %v1622_v51 = vpop.f32.mrf.mxu0  ;;  %831 = vrot.lane.b32.xlu0 %v731_v49, %s1706_s26 }
 0x192   : > { %895 = vrot.lane.b32.xlu1 %v724_v37, %s1702_s21  ;;  %v671_v52 = vadd.f32 %v1622_v51, %v1991_v14 }
 0x193   : > { %v665_v53 = vpop.f32.mrf.mxu0 }
 0x194   : > { %v681_v55 = vmax.f32 %v671_v52, 0.0  ;;  %v666_v56 = vadd.f32 %v1991_v14, %v665_v53  ;;  %v2072_v63 = vld [vmem:[#allocation2 + $0x60] sm:$0xff]  ;;  %v2114_v14 = vpop.permute.xlu1 %999 }
 0x195   : > { %955 = vrot.lane.b32.xlu0 %v2048_v57, %s1705_s23  ;;  %v726_v1 = vld [vmem:[#allocation2 + $0x61] sm:$0xff] }
 0x196   : > { %833 = vrot.lane.b32.xlu1 %v755_v39, %s1706_s26  ;;  %711 = vst.msk [vmem:[#allocation2 + $0x81] sm:$0xff] %vm465_vm1, %v681_v55  ;;  %v680_v59 = vmax.f32 %v666_v56, 0.0  ;;  %v757_v2 = vld [vmem:[#allocation2 + $0x62] sm:$0xff]  ;;  %v725_v4 = vld [vmem:[#allocation2 + $0x51] sm:$0xff] }
 0x197   : > { %v733_v5 = vld [vmem:[#allocation2 + $0x52] sm:$0xff] }
 0x198   : > { %710 = vst.msk [vmem:[#allocation2 + $0x71] sm:$0xff] %vm465_vm1, %v680_v59  ;;  %v2091_v6 = vld [vmem:[#allocation2 + $0x50] sm:$0xff]  ;;  %v2123_v22 = vpop.permute.xlu1 %1031 }
 0x199   : > { %987 = vrot.lane.b32.xlu0 %v723_v45, %s1707_s27 }
 0x19a   : > { %957 = vrot.lane.b32.xlu1 %v2017_v36, %s1705_s23 }
 0x19d   : > { %925 = vrot.lane.b32.xlu0 %v731_v49, %s1709_s11  ;;  %v743_v7 = vld [vmem:[#allocation2 + $0x80] sm:$0xff] }
 0x19e   : > { %989 = vrot.lane.b32.xlu1 %v724_v37, %s1707_s27  ;;  %v751_v8 = vld [vmem:[#allocation2 + $0x81] sm:$0xff] }
 0x19f   : > { %v759_v9 = vld [vmem:[#allocation2 + $0x82] sm:$0xff]  ;;  %v727_v17 = vld [vmem:[#allocation2 + $0x71] sm:$0xff] }
 0x1a0   : > { %v2116_v18 = vld [vmem:[#allocation2 + $0x70] sm:$0xff] }
 0x1a1   : > { %867 = vrot.lane.b32.xlu0 %v2072_v63, %s1701_s18  ;;  %v735_v21 = vld [vmem:[#allocation2 + $0x72] sm:$0xff] }
 0x1a2   : > { %1021 = vrot.lane.b32.xlu1 %v755_v39, %s1708_s28 }
 0x1a5   : > { %805 = vrot.lane.b32.xlu0 %v726_v1, %s1698_s30 }
 0x1a6   : > { %861 = vrot.lane.b32.xlu1 %v2048_v57, %s1701_s18 }
 0x1a9   : > { %931 = vrot.lane.b32.xlu0 %v757_v2, %s1709_s11 }
 0x1aa   : > { %893 = vrot.lane.b32.xlu1 %v723_v45, %s1702_s21 }
 0x1ad   : > { %803 = vrot.lane.b32.xlu0 %v725_v4, %s1698_s30 }
 0x1ae   : > { %1019 = vrot.lane.b32.xlu1 %v731_v49, %s1708_s28 }
 0x1b1   : > { %835 = vrot.lane.b32.xlu0 %v733_v5, %s1706_s26 }
 0x1b2   : > { %899 = vrot.lane.b32.xlu1 %v726_v1, %s1702_s21 }
 0x1b5   : > { %959 = vrot.lane.b32.xlu0 %v2091_v6, %s1705_s23 }
 0x1b6   : > { %837 = vrot.lane.b32.xlu1 %v757_v2, %s1706_s26 }
 0x1b9   : > { %991 = vrot.lane.b32.xlu0 %v725_v4, %s1707_s27 }
 0x1ba   : > { %961 = vrot.lane.b32.xlu1 %v2072_v63, %s1705_s23 }
 0x1bd   : > { %929 = vrot.lane.b32.xlu0 %v733_v5, %s1709_s11 }
 0x1be   : > { %993 = vrot.lane.b32.xlu1 %v726_v1, %s1707_s27 }
 0x1c1   : > { %871 = vrot.lane.b32.xlu0 %v743_v7, %s1701_s18 }
 0x1c2   : > { %1025 = vrot.lane.b32.xlu1 %v757_v2, %s1708_s28 }
 0x1c5   : > { %903 = vrot.lane.b32.xlu0 %v751_v8, %s1702_s21 }
 0x1c6   : > { %865 = vrot.lane.b32.xlu1 %v2091_v6, %s1701_s18 }
 0x1c9   : > { %935 = vrot.lane.b32.xlu0 %v759_v9, %s1709_s11 }
 0x1ca   : > { %897 = vrot.lane.b32.xlu1 %v725_v4, %s1702_s21 }
 0x1cd   : > { %997 = vrot.lane.b32.xlu0 %v751_v8, %s1707_s27 }
 0x1ce   : > { %1023 = vrot.lane.b32.xlu1 %v733_v5, %s1708_s28 }
 0x1d1   : > { %1029 = vrot.lane.b32.xlu0 %v759_v9, %s1708_s28 }
 0x1d2   : > { %965 = vrot.lane.b32.xlu1 %v743_v7, %s1705_s23 }
 0x1d5   : > { %807 = vrot.lane.b32.xlu0 %v727_v17, %s1698_s30 }
 0x1d6   : > { %869 = vrot.lane.b32.xlu1 %v2116_v18, %s1701_s18 }
 0x1d9   : > { %839 = vrot.lane.b32.xlu0 %v735_v21, %s1706_s26 }
 0x1da   : > { %901 = vrot.lane.b32.xlu1 %v727_v17, %s1702_s21 }
 0x1dd   : > { %963 = vrot.lane.b32.xlu0 %v2116_v18, %s1705_s23  ;;  %s1561_s23 = sshll.u32 %s2280_s25, 6 }
 0x1de   : > { %933 = vrot.lane.b32.xlu1 %v735_v21, %s1709_s11 }
 0x1df   : > { %v892_v23 = vpop.permute.xlu0 %891 }
 0x1e0   : > { %v860_v24 = vpop.permute.xlu1 %859 }
 0x1e1   : > { %995 = vrot.lane.b32.xlu0 %v727_v17, %s1707_s27 }
 0x1e2   : > { %1293 = vrot.lane.b32.xlu1 %v1811_v12, %s1703_s22 }
 0x1e3   : > { %v924_v25 = vpop.permute.xlu0 %923 }
 0x1e4   : > { %v798_v27 = vpop.permute.xlu1 %797 }
 0x1e5   : > { %1027 = vrot.lane.b32.xlu0 %v735_v21, %s1708_s28  ;;  %v1043_v62 = vsel %vm465_vm1, %v1997_v26, %v798_v27  ;;  %s2250_s28 = scalar_lea.vmem %s2278_s7, %s1561_s23 }
 0x1e6   : > { %1299 = vrot.lane.b32.xlu1 %v1849_v19, %s1703_s22 }
 0x1e7   : > { %v858_v30 = vpop.permute.xlu0 %857 }
 0x1e8   : > { %v830_v28 = vpop.permute.xlu1 %829 }
 0x1e9   : > { %1291 = vrot.lane.b32.xlu0 %v1802_v10, %s1703_s22  ;;  %v1057_v10 = vsel %vm501_vm5, %v1976_v11, %v858_v30  ;;  %v1051_v0 = vsel %vm483_vm3, %v1043_v62, %v830_v28 }
 0x1ea   : > { %1301 = vrot.lane.b32.xlu1 %v1855_v20, %s1703_s22 }
 0x1eb   : > { %v890_v12 = vpop.permute.xlu0 %889 }
 0x1ec   : > { %v954_v31 = vpop.permute.xlu1 %953  ;;  %v1065_v20 = vsel %vm519_vm7, %v1057_v10, %v890_v12 }
 0x1ed   : > { %1295 = vrot.lane.b32.xlu0 %v1827_v15, %s1703_s22 }
 0x1f0   : > { %v986_v32 = vpop.permute.xlu1 %985 }
 0x1f1   : > { %1297 = vrot.lane.b32.xlu0 %v1833_v16, %s1703_s22 }
 0x1f3   : > { %v864_v34 = vpop.permute.xlu0 %863 }
 0x1f4   : > { %v1018_v33 = vpop.permute.xlu1 %1017 }
 0x1f7   : > { %v2142_v19 = vpop.permute.xlu0 %801 }
 0x1f8   : > { %v796_v35 = vpop.permute.xlu1 %795 }
 0x1f9   : > { %v1042_v55 = vsel %vm465_vm1, %v2004_v29, %v796_v35 }
 0x1fb   : > { %v928_v37 = vpop.permute.xlu0 %927 }
 0x1fc   : > { %v828_v38 = vpop.permute.xlu1 %827 }
 0x1fd   : > { %v1050_v58 = vsel %vm483_vm3, %v1042_v55, %v828_v38 }
 0x1fe   : > { %v1058_v59 = vsel %vm501_vm5, %v1050_v58, %v860_v24 }
 0x1ff   : > { %v800_v15 = vpop.permute.xlu0 %799  ;;  %v1066_v1 = vsel %vm519_vm7, %v1058_v59, %v892_v23 }
 0x200   : > { %v922_v39 = vpop.permute.xlu1 %921  ;;  %v1044_v42 = vsel %vm465_vm1, %v2048_v57, %v800_v15  ;;  %v1075_v7 = vsel %vm1073_vm11, %v1066_v1, %v924_v25  ;;  %v1045_v15 = vsel %vm465_vm1, %v2017_v36, %v2142_v19 }
 0x201   : > { %v1074_v40 = vsel %vm1073_vm11, %v1065_v20, %v922_v39 }
 0x202   : > { %v1083_v16 = vsel %vm1082_vm12, %v1074_v40, %v954_v31 }
 0x203   : > { %v1092_v41 = vsel %vm1091_vm13, %v1083_v16, %v986_v32  ;;  %v832_v43 = vpop.permute.xlu0 %831 }
 0x204   : > { %v896_v44 = vpop.permute.xlu1 %895  ;;  %v1101_v11 = vsel %vm1100_vm14, %v1092_v41, %v1018_v33  ;;  %v1052_v45 = vsel %vm483_vm3, %v1044_v42, %v832_v43 }
 0x205   : > { %1641 = vmatprep.mubr.msk.f32.mxu1 %vm1125_vm15, %v1101_v11  ;;  %v1060_v46 = vsel %vm501_vm5, %v1052_v45, %v864_v34 }
 0x206   : > { %v1068_v47 = vsel %vm519_vm7, %v1060_v46, %v896_v44 }
 0x207   : > { %v956_v48 = vpop.permute.xlu0 %955  ;;  %v1077_v50 = vsel %vm1073_vm11, %v1068_v47, %v928_v37 }
 0x208   : > { %v834_v49 = vpop.permute.xlu1 %833  ;;  %v1084_v9 = vsel %vm1082_vm12, %v1075_v7, %v956_v48 }
 0x209   : > { %v1053_v39 = vsel %vm483_vm3, %v1045_v15, %v834_v49 }
 0x20b   : > { %v988_v51 = vpop.permute.xlu0 %987 }
 0x20c   : > { %v958_v52 = vpop.permute.xlu1 %957  ;;  %v1093_v26 = vsel %vm1091_vm13, %v1084_v9, %v988_v51 }
 0x20f   : > { %v926_v53 = vpop.permute.xlu0 %925 }
 0x210   : > { %v990_v54 = vpop.permute.xlu1 %989 }
 0x213   : > { %v2160_v56 = vpop.permute.xlu0 %867 }
 0x214   : > { %v1022_v57 = vpop.permute.xlu1 %1021 }
 0x217   : > { %v806_v60 = vpop.permute.xlu0 %805 }
 0x218   : > { %v862_v61 = vpop.permute.xlu1 %861 }
 0x219   : > { %v1059_v2 = vsel %vm501_vm5, %v1051_v0, %v862_v61 }
 0x21b   : > { %v2169_v4 = vpop.permute.xlu0 %931 }
 0x21c   : > { %v894_v29 = vpop.permute.xlu1 %893 }
 0x21d   : > { %v1067_v5 = vsel %vm519_vm7, %v1059_v2, %v894_v29 }
 0x21e   : > { %v1076_v8 = vsel %vm1073_vm11, %v1067_v5, %v926_v53 }
 0x21f   : > { %v1085_v17 = vsel %vm1082_vm12, %v1076_v8, %v958_v52  ;;  %v804_v21 = vpop.permute.xlu0 %803 }
 0x220   : > { %v1020_v24 = vpop.permute.xlu1 %1019  ;;  %v1094_v23 = vsel %vm1091_vm13, %v1085_v17, %v990_v54  ;;  %v1046_v52 = vsel %vm465_vm1, %v2091_v6, %v804_v21 }
 0x221   : > { %v1102_v27 = vsel %vm1100_vm14, %v1093_v26, %v1020_v24  ;;  %v1103_v28 = vsel %vm1100_vm14, %v1094_v23, %v1022_v57  ;;  %v1047_v57 = vsel %vm465_vm1, %v2072_v63, %v806_v60 }
 0x222   : > { %1642 = vmatmul.mubr.msk.f32.vlgmr.msra.gmra.mxu1 %vm1125_vm15, %v1102_v27 }
 0x223   : > { %1644 = vmatprep.mubr.msk.f32.mxu1 %vm1125_vm15, %v1103_v28  ;;  %1668 = vmatpush3.msk.msra.mxu1 %vm565_vm0, %v1981_v13  ;;  %v836_v25 = vpop.permute.xlu0 %835 }
 0x224   : > { %v900_v30 = vpop.permute.xlu1 %899  ;;  %v1054_v58 = vsel %vm483_vm3, %v1046_v52, %v836_v25 }
 0x225   : > { %v1062_v6 = vsel %vm501_vm5, %v1054_v58, %v2160_v56 }
 0x226   : > { %v1070_v60 = vsel %vm519_vm7, %v1062_v6, %v900_v30 }
 0x227   : > { %v960_v31 = vpop.permute.xlu0 %959  ;;  %v1079_v17 = vsel %vm1073_vm11, %v1070_v60, %v2169_v4 }
 0x228   : > { %v838_v12 = vpop.permute.xlu1 %837  ;;  %v1086_v43 = vsel %vm1082_vm12, %v1077_v50, %v960_v31 }
 0x229   : > { %v1055_v61 = vsel %vm483_vm3, %v1047_v57, %v838_v12 }
 0x22b   : > { %v992_v32 = vpop.permute.xlu0 %991 }
 0x22c   : > { %v962_v33 = vpop.permute.xlu1 %961  ;;  %v1095_v11 = vsel %vm1091_vm13, %v1086_v43, %v992_v32  ;;  %v1657_v32 = vpop.f32.mrf.mxu0 }
 0x22f   : > { %v930_v34 = vpop.permute.xlu0 %929 }
 0x230   : > { %v994_v35 = vpop.permute.xlu1 %993 }
 0x233   : > { %v872_v37 = vpop.permute.xlu0 %871 }
 0x234   : > { %v1026_v38 = vpop.permute.xlu1 %1025 }
 0x237   : > { %v904_v10 = vpop.permute.xlu0 %903 }
 0x238   : > { %v866_v20 = vpop.permute.xlu1 %865 }
 0x239   : > { %v1061_v13 = vsel %vm501_vm5, %v1053_v39, %v866_v20 }
 0x23b   : > { %v936_v40 = vpop.permute.xlu0 %935 }
 0x23c   : > { %v898_v16 = vpop.permute.xlu1 %897 }
 0x23d   : > { %v1069_v41 = vsel %vm519_vm7, %v1061_v13, %v898_v16 }
 0x23e   : > { %v1078_v42 = vsel %vm1073_vm11, %v1069_v41, %v930_v34 }
 0x23f   : > { %v1087_v44 = vsel %vm1082_vm12, %v1078_v42, %v962_v33  ;;  %v998_v45 = vpop.permute.xlu0 %997  ;;  %v1549_v33 = vld [vmem:[%s2277_s6] ss:$0 sm:$0xff] }
 0x240   : > { %v1024_v46 = vpop.permute.xlu1 %1023  ;;  %v1096_v36 = vsel %vm1091_vm13, %v1087_v44, %v994_v35 }
 0x241   : > { %v1104_v19 = vsel %vm1100_vm14, %v1095_v11, %v1024_v46  ;;  %v1105_v47 = vsel %vm1100_vm14, %v1096_v36, %v1026_v38 }
 0x242   : > { %1645 = vmatmul.mubr.msk.f32.gmra.mxu1 %vm1125_vm15, %v1104_v19 }
 0x243   : > { %1647 = vmatprep.mubr.msk.f32.mxu1 %vm1125_vm15, %v1105_v47  ;;  %v1030_v48 = vpop.permute.xlu0 %1029 }
 0x244   : > { %v966_v49 = vpop.permute.xlu1 %965 }
 0x247   : > { %v808_v51 = vpop.permute.xlu0 %807 }
 0x248   : > { %v870_v50 = vpop.permute.xlu1 %869  ;;  %v1048_v53 = vsel %vm465_vm1, %v2116_v18, %v808_v51 }
 0x249   : > { %v1063_v0 = vsel %vm501_vm5, %v1055_v61, %v870_v50 }
 0x24b   : > { %v840_v54 = vpop.permute.xlu0 %839 }
 0x24c   : > { %v902_v55 = vpop.permute.xlu1 %901  ;;  %v1056_v59 = vsel %vm483_vm3, %v1048_v53, %v840_v54 }
 0x24d   : > { %v1064_v62 = vsel %vm501_vm5, %v1056_v59, %v872_v37  ;;  %v1071_v18 = vsel %vm519_vm7, %v1063_v0, %v902_v55  ;;  %v1388_v37 = vpop.f32.mrf.mxu0 }
 0x24e   : > { %v1072_v29 = vsel %vm519_vm7, %v1064_v62, %v904_v10  ;;  %v1394_v10 = vadd.f32 %v1657_v32, %v1549_v33  ;;  %v1389_v39 = vadd.f32 %v1549_v33, %v1388_v37 }
 0x24f   : > { %v964_v1 = vpop.permute.xlu0 %963  ;;  %v1081_v5 = vsel %vm1073_vm11, %v1072_v29, %v936_v40 }
 0x250   : > { %v934_v2 = vpop.permute.xlu1 %933  ;;  %v1088_v56 = vsel %vm1082_vm12, %v1079_v17, %v964_v1  ;;  %v1090_v21 = vsel %vm1082_vm12, %v1081_v5, %v2110_v3 }
 0x251   : > { %v1080_v63 = vsel %vm1073_vm11, %v1071_v18, %v934_v2  ;;  %v1099_v4 = vsel %vm1091_vm13, %v1090_v21, %v2114_v14 }
 0x252   : > { %v1089_v7 = vsel %vm1082_vm12, %v1080_v63, %v966_v49  ;;  %v1108_v3 = vsel %vm1100_vm14, %v1099_v4, %v2123_v22  ;;  %v1540_v22 = vld [vmem:[%s2275_s4] ss:$0 sm:$0xff] }
 0x253   : > { %v996_v8 = vpop.permute.xlu0 %995  ;;  %v1098_v26 = vsel %vm1091_vm13, %v1089_v7, %v998_v45 }
 0x254   : > { %v1294_v9 = vpop.permute.xlu1 %1293  ;;  %v1097_v24 = vsel %vm1091_vm13, %v1088_v56, %v996_v8  ;;  %v1107_v25 = vsel %vm1100_vm14, %v1098_v26, %v1030_v48 }
 0x257   : > { %v1028_v23 = vpop.permute.xlu0 %1027 }
 0x258   : > { %v1106_v27 = vsel %vm1100_vm14, %v1097_v24, %v1028_v23  ;;  %v1300_v28 = vpop.permute.xlu1 %1299 }
 0x259   : > { %1648 = vmatmul.mubr.msk.f32.gmra.mxu1 %vm1125_vm15, %v1106_v27 }
 0x25a   : > { %1650 = vmatprep.mubr.msk.f32.mxu1 %vm1125_vm15, %v1107_v25 }
 0x25b   : > { %v1292_v30 = vpop.permute.xlu0 %1291 }
 0x25c   : > { %1658 = vmatprep.mubr.msk.f32.mxu0 %vm464_vm10, %v1292_v30  ;;  %v1302_v31 = vpop.permute.xlu1 %1301 }
 0x25d   : > { %1651 = vmatmul.mubr.msk.f32.gmra.mxu1 %vm1125_vm15, %v1108_v3  ;;  %1659 = vmatmul.mubr.msk.f32.gmra.mxu0 %vm464_vm10, %v1294_v9 }
 0x25e   : > { %1664 = vmatprep.mubr.msk.f32.mxu1 %vm464_vm10, %v1300_v28 }
 0x25f   : > { %v1296_v12 = vpop.permute.xlu0 %1295 }
 0x260   : > { %1661 = vmatprep.mubr.msk.f32.mxu0 %vm464_vm10, %v1296_v12 }
 0x261   : > { %1665 = vmatmul.mubr.msk.f32.vlgmr.msra.gmra.mxu1 %vm464_vm10, %v1302_v31 }
 0x263   : > { %v1298_v14 = vpop.permute.xlu0 %1297 }
 0x264   : > { %1662 = vmatmul.mubr.msk.f32.gmra.mxu0 %vm464_vm10, %v1298_v14 }
 0x2e2   : > { %v1643_v34 = vpop.f32.mrf.mxu1 }
 0x2e3   : > { %v1222_v35 = vadd.f32 %v1643_v34, %v1540_v22 }
 0x2e4   : > { %v1216_v38 = vpop.f32.mrf.mxu1 }
 0x2e5   : > { %v1256_v20 = vmax.f32 %v1222_v35, 0.0  ;;  %v1217_v15 = vadd.f32 %v1540_v22, %v1216_v38 }
 0x2e7   : > { %v1428_v13 = vadd.f32 %v1394_v10, %v1256_v20  ;;  %v1255_v40 = vmax.f32 %v1217_v15, 0.0 }
 0x2e9   : > { %v1436_v16 = vmax.f32 %v1428_v13, 0.0  ;;  %v1427_v41 = vadd.f32 %v1389_v39, %v1255_v40 }
 0x2eb   : > { %1444 = vst.msk [vmem:[%s2250_s28 + $0x8] sm:$0xff] %vm465_vm1, %v1436_v16  ;;  %v1435_v42 = vmax.f32 %v1427_v41, 0.0 }
 0x2ed   : > { %1443 = vst.msk [vmem:[%s2250_s28] sm:$0xff] %vm465_vm1, %v1435_v42 }
 0x302   : > { %v1646_v43 = vpop.f32.mrf.mxu1 }
 0x303   : > { %v1232_v45 = vadd.f32 %v1646_v43, %v1540_v22 }
 0x304   : > { %v1226_v44 = vpop.f32.mrf.mxu1 }
 0x305   : > { %v1227_v36 = vadd.f32 %v1540_v22, %v1226_v44  ;;  %v1258_v48 = vmax.f32 %v1232_v45, 0.0 }
 0x307   : > { %v1257_v53 = vmax.f32 %v1227_v36, 0.0 }
 0x319   : > { %v1649_v11 = vpop.f32.mrf.mxu1 }
 0x31a   : > { %v1242_v58 = vadd.f32 %v1649_v11, %v1540_v22 }
 0x31b   : > { %v1236_v46 = vpop.f32.mrf.mxu1 }
 0x31c   : > { %v1237_v18 = vadd.f32 %v1540_v22, %v1236_v46  ;;  %v1260_v7 = vmax.f32 %v1242_v58, 0.0 }
 0x31d   : > { %v1652_v19 = vpop.f32.mrf.mxu1  ;;  %v1660_v47 = vpop.f32.mrf.mxu0 }
 0x31e   : > { %v1252_v49 = vadd.f32 %v1652_v19, %v1540_v22  ;;  %v1404_v51 = vadd.f32 %v1660_v47, %v1549_v33  ;;  %v1259_v26 = vmax.f32 %v1237_v18, 0.0 }
 0x31f   : > { %v1246_v50 = vpop.f32.mrf.mxu1  ;;  %v1398_v52 = vpop.f32.mrf.mxu0 }
 0x320   : > { %v1430_v54 = vadd.f32 %v1404_v51, %v1258_v48  ;;  %v1247_v55 = vadd.f32 %v1540_v22, %v1246_v50  ;;  %v1399_v57 = vadd.f32 %v1549_v33, %v1398_v52  ;;  %v1262_v61 = vmax.f32 %v1252_v49, 0.0 }
 0x321   : > { %v1666_v59 = vpop.f32.mrf.mxu1 }
 0x322   : > { %v1438_v62 = vmax.f32 %v1430_v54, 0.0  ;;  %v1429_v0 = vadd.f32 %v1399_v57, %v1257_v53  ;;  %v1424_v6 = vadd.f32 %v1666_v59, %v1549_v33  ;;  %v1261_v2 = vmax.f32 %v1247_v55, 0.0 }
 0x323   : > { %v1418_v1 = vpop.f32.mrf.mxu1 }
 0x324   : > { %1446 = vst.msk [vmem:[%s2250_s28 + $0x18] sm:$0xff] %vm465_vm1, %v1438_v62  ;;  %v1437_v29 = vmax.f32 %v1429_v0, 0.0  ;;  %v1434_v63 = vadd.f32 %v1424_v6, %v1262_v61  ;;  %v1419_v60 = vadd.f32 %v1549_v33, %v1418_v1  ;;  %v1663_v5 = vpop.f32.mrf.mxu0 }
 0x325   : > { %v1414_v8 = vadd.f32 %v1663_v5, %v1549_v33 }
 0x326   : > { %1445 = vst.msk [vmem:[%s2250_s28 + $0x10] sm:$0xff] %vm465_vm1, %v1437_v29  ;;  %v1442_v9 = vmax.f32 %v1434_v63, 0.0  ;;  %v1433_v17 = vadd.f32 %v1419_v60, %v1261_v2  ;;  %v1408_v56 = vpop.f32.mrf.mxu0 }
 0x327   : > { %v1432_v21 = vadd.f32 %v1414_v8, %v1260_v7  ;;  %v1409_v24 = vadd.f32 %v1549_v33, %v1408_v56 }
 0x328   : > { %1450 = vst.msk [vmem:[%s2250_s28 + $0x38] sm:$0xff] %vm465_vm1, %v1442_v9  ;;  %v1441_v23 = vmax.f32 %v1433_v17, 0.0 }
 0x329   : > { %v1440_v27 = vmax.f32 %v1432_v21, 0.0  ;;  %v1431_v28 = vadd.f32 %v1409_v24, %v1259_v26 }
 0x32a   : > { %1449 = vst.msk [vmem:[%s2250_s28 + $0x30] sm:$0xff] %vm465_vm1, %v1441_v23 }
 0x32b   : > { %1448 = vst.msk [vmem:[%s2250_s28 + $0x28] sm:$0xff] %vm465_vm1, %v1440_v27  ;;  %v1439_v25 = vmax.f32 %v1431_v28, 0.0 }
 0x32d   : > { %1447 = vst.msk [vmem:[%s2250_s28 + $0x20] sm:$0xff] %vm465_vm1, %v1439_v25 }
 0x32e PF: > { %s17_s24 = sadd.s32 1, %s1696_s24  }
 0x32f   : > { %p14_p4 = scmp.ge.s32.totalorder %s17_s24, 4  }
 0x331   :  { %16 = sbr.rel (!%p14_p4) target bundleno = 1 (0x1), region = 81 }

</bundles_post_ra>
